<compile_context>
chip_gen: v7x
topology: tpu7x:2x2x1
jax: 0.10.0
libtpu: 0.0.40
codegen_flags: <defaults>
</compile_context>

<pallas_src>
import functools

import jax
import jax.numpy as jnp
from jax.experimental import pallas as pl
from jax.experimental.pallas import tpu as pltpu

LANE = 128


def _round_up(x, m):
    return ((x + m - 1) // m) * m


def rnn_kernel(x_ref, h_ref, w1_ref, b1_ref, wg_ref, bg_ref, w2_ref, b2_ref,
               q_ref, hout_ref):
    Hp = hout_ref.shape[-1]
    bf16, f32 = jnp.bfloat16, jnp.float32

    # fc1 + ReLU (obs already bf16; f32 accumulate / elementwise).
    a1 = jnp.dot(x_ref[...], w1_ref[...], preferred_element_type=f32) + b1_ref[...]
    a1 = jnp.maximum(a1, 0.0)

    h_in = h_ref[...]  # f32, kept exact for the convex update

    # Fused GRU matmul: one (tb, 2*Hp) x (2*Hp, 4*Hp) MXU pass.
    # Column blocks: [r | z | n_x | n_h]; r/z biases pre-summed at pack time.
    xh = jnp.concatenate([a1.astype(bf16), h_in.astype(bf16)], axis=-1)
    g = jnp.dot(xh, wg_ref[...], preferred_element_type=f32) + bg_ref[...]

    pre_r = g[:, 0:Hp]
    pre_z = g[:, Hp:2 * Hp]
    i_n = g[:, 2 * Hp:3 * Hp]
    h_n = g[:, 3 * Hp:4 * Hp]

    # sigmoid(v) = 0.5*tanh(0.5*v)+0.5  (single EUP op, no overflow)
    r = 0.5 * jnp.tanh(0.5 * pre_r) + 0.5
    z = 0.5 * jnp.tanh(0.5 * pre_z) + 0.5
    n = jnp.tanh(i_n + r * h_n)
    h_out = (1.0 - z) * n + z * h_in

    hout_ref[...] = h_out.astype(hout_ref.dtype)

    # fc2 (Q-values), lane-dense padded output block.
    q = jnp.dot(h_out.astype(bf16), w2_ref[...], preferred_element_type=f32) + b2_ref[...]
    q_ref[...] = q.astype(q_ref.dtype)


@functools.partial(jax.jit, static_argnames=("hidden_dim", "n_actions", "block_b"))
def rnn_forward(obs, hidden_state, packed, *, hidden_dim, n_actions, block_b=256):
    B, D = obs.shape
    Dp, Hp = packed["w1"].shape
    Ap = packed["w2"].shape[1]

    # obs -> bf16 in the wrapper (halves input DMA bytes); lane-pad to Dp.
    x = obs.astype(jnp.bfloat16)
    if Dp != D:
        x = jnp.pad(x, ((0, 0), (0, Dp - D)))
    h = hidden_state.reshape(-1, hidden_dim).astype(jnp.float32)
    if Hp != hidden_dim:
        h = jnp.pad(h, ((0, 0), (0, Hp - hidden_dim)))

    # Batch tiling:
    #  * B >= 256: 2-way "parallel" split (v7x megacore), each block >= 128 rows.
    #  * otherwise: single block (grid is a sequential loop on 1-TC v5e/v6e parts).
    #  * tiles are multiples of 16 rows (bf16 LHS sublane packing); a tile that would
    #    exceed B collapses to the full batch (full-dim block is always legal).
    if B >= 256:
        tb = _round_up(pl.cdiv(B, 2), 16)
    else:
        tb = _round_up(B, 16)
    tb = min(tb, block_b)
    if tb >= B:
        tb = B
    nb = pl.cdiv(B, tb)

    row = lambda i: (i, 0)
    const = lambda i: (0, 0)  # weights/biases: same block every step -> resident in VMEM

    q_pad, h_pad = pl.pallas_call(
        rnn_kernel,
        out_shape=(
            jax.ShapeDtypeStruct((B, Ap), jnp.float32),
            jax.ShapeDtypeStruct((B, Hp), jnp.float32),
        ),
        grid_spec=pltpu.PrefetchScalarGridSpec(
            num_scalar_prefetch=0,
            grid=(nb,),
            in_specs=[
                pl.BlockSpec((tb, Dp), row),           # obs tile (bf16)
                pl.BlockSpec((tb, Hp), row),           # h_in tile (f32)
                pl.BlockSpec((Dp, Hp), const),         # fc1 W^T (bf16)
                pl.BlockSpec((1, Hp), const),          # fc1 b (f32)
                pl.BlockSpec((2 * Hp, 4 * Hp), const), # fused GRU weight (bf16)
                pl.BlockSpec((1, 4 * Hp), const),      # fused GRU bias (f32)
                pl.BlockSpec((Hp, Ap), const),         # fc2 W^T (bf16)
                pl.BlockSpec((1, Ap), const),          # fc2 b (f32)
            ],
            out_specs=[
                pl.BlockSpec((tb, Ap), row),           # q (lane-dense padded)
                pl.BlockSpec((tb, Hp), row),           # h_out
            ],
        ),
        compiler_params=pltpu.CompilerParams(
            dimension_semantics=("parallel",),
            vmem_limit_bytes=32 * 1024 * 1024,
        ),
    )(x, h, packed["w1"], packed["b1"], packed["w_gru"], packed["b_gru"],
      packed["w2"], packed["b2"])

    return q_pad[:, :n_actions], h_pad[:, :hidden_dim]


def init_rnn_params(key, input_shape, rnn_hidden_dim, n_actions):
    """PyTorch-default init U(-1/sqrt(fan_in), 1/sqrt(fan_in)), PyTorch weight layouts."""
    H, D, A = rnn_hidden_dim, input_shape, n_actions

    def uniform(k, shape, fan_in):
        bound = 1.0 / jnp.sqrt(jnp.float32(fan_in))
        return jax.random.uniform(k, shape, jnp.float32, -bound, bound)

    ks = jax.random.split(key, 8)
    return {
        "fc1_w": uniform(ks[0], (H, D), D),
        "fc1_b": uniform(ks[1], (H,), D),
        "gru_w_ih": uniform(ks[2], (3 * H, H), H),   # rows ordered [r, z, n] (PyTorch GRUCell)
        "gru_b_ih": uniform(ks[3], (3 * H,), H),
        "gru_w_hh": uniform(ks[4], (3 * H, H), H),
        "gru_b_hh": uniform(ks[5], (3 * H,), H),
        "fc2_w": uniform(ks[6], (A, H), H),
        "fc2_b": uniform(ks[7], (A,), H),
    }


def pack_params(params):
    """Pre-transpose to (in, out), pad every lane axis to a multiple of 128, cast weights to
    bf16 (biases stay f32), and build the fused GRU weight:

        W_gru (2*Hp, 4*Hp), column blocks [r | z | n_x | n_h]
          rows   0:Hp  (x path): [W_ir^T | W_iz^T | W_in^T |   0   ]
          rows Hp:2Hp  (h path): [W_hr^T | W_hz^T |   0    | W_hn^T]
        b_gru (1, 4*Hp) = [b_ir+b_hr | b_iz+b_hz | b_in | b_hn]

    Keeping n_x / n_h separate preserves the exact GRUCell formula n = tanh(i_n + r*h_n)
    while doing all gate matmuls in a single K=2*Hp MXU pass."""
    H, D = params["fc1_w"].shape
    A = params["fc2_w"].shape[0]
    Dp, Hp, Ap = _round_up(D, LANE), _round_up(H, LANE), _round_up(A, LANE)

    def pad_w(w_t, rows_to, cols_to):      # (in, out) f32 -> padded bf16
        r, c = w_t.shape
        return jnp.pad(w_t, ((0, rows_to - r), (0, cols_to - c))).astype(jnp.bfloat16)

    def pad_b(b, cols_to):
        return jnp.pad(b.reshape(1, -1), ((0, 0), (0, cols_to - b.shape[-1]))).astype(jnp.float32)

    def gate_w(w, g):                      # PyTorch (3H, H) -> gate g transposed + padded
        blk = w[g * H:(g + 1) * H, :].T    # (H, H) in (in, out) layout
        return jnp.pad(blk, ((0, Hp - H), (0, Hp - H)))

    def gate_b(b, g):
        return jnp.pad(b[g * H:(g + 1) * H], (0, Hp - H))

    zeros = jnp.zeros((Hp, Hp), jnp.float32)
    w_ih, w_hh = params["gru_w_ih"], params["gru_w_hh"]
    b_ih, b_hh = params["gru_b_ih"], params["gru_b_hh"]

    top = jnp.concatenate([gate_w(w_ih, 0), gate_w(w_ih, 1), gate_w(w_ih, 2), zeros], axis=1)
    bot = jnp.concatenate([gate_w(w_hh, 0), gate_w(w_hh, 1), zeros, gate_w(w_hh, 2)], axis=1)
    w_gru = jnp.concatenate([top, bot], axis=0).astype(jnp.bfloat16)          # (2Hp, 4Hp)

    b_gru = jnp.concatenate([
        gate_b(b_ih, 0) + gate_b(b_hh, 0),
        gate_b(b_ih, 1) + gate_b(b_hh, 1),
        gate_b(b_ih, 2),
        gate_b(b_hh, 2),
    ]).reshape(1, -1).astype(jnp.float32)                                     # (1, 4Hp)

    return {
        "w1": pad_w(params["fc1_w"].T, Dp, Hp),
        "b1": pad_b(params["fc1_b"], Hp),
        "w_gru": w_gru,
        "b_gru": b_gru,
        "w2": pad_w(params["fc2_w"].T, Hp, Ap),
        "b2": pad_b(params["fc2_b"], Ap),
    }


def rnn_reference(obs, hidden_state, params, rnn_hidden_dim):
    """Pure-JAX reference with exact PyTorch GRUCell semantics (bf16 matmul inputs, f32 acc)."""
    bf16, f32 = jnp.bfloat16, jnp.float32

    def mm(a, w_t):
        return jnp.dot(a.astype(bf16), w_t.astype(bf16), preferred_element_type=f32)

    x = jnp.maximum(mm(obs, params["fc1_w"].T) + params["fc1_b"], 0.0)
    h = hidden_state.reshape(-1, rnn_hidden_dim).astype(f32)
    gi = mm(x, params["gru_w_ih"].T) + params["gru_b_ih"]
    gh = mm(h, params["gru_w_hh"].T) + params["gru_b_hh"]
    i_r, i_z, i_n = jnp.split(gi, 3, axis=-1)
    h_r, h_z, h_n = jnp.split(gh, 3, axis=-1)
    r = jax.nn.sigmoid(i_r + h_r)
    z = jax.nn.sigmoid(i_z + h_z)
    n = jnp.tanh(i_n + r * h_n)
    h_out = (1.0 - z) * n + z * h
    q = mm(h_out, params["fc2_w"].T) + params["fc2_b"]
    return q, h_out


if __name__ == "__main__":
    key = jax.random.PRNGKey(0)
    input_shape = 30        # per-agent observation size
    rnn_hidden_dim = 64     # args.rnn_hidden_dim
    n_actions = 6           # args.n_actions
    batch = 64              # batch of agents/episodes -> single grid block of 64 rows

    key, k_obs, k_h, k_p = jax.random.split(key, 4)
    obs = jax.random.normal(k_obs, (batch, input_shape), jnp.float32)
    hidden_state = jax.random.normal(k_h, (batch, rnn_hidden_dim), jnp.float32)
    params = init_rnn_params(k_p, input_shape, rnn_hidden_dim, n_actions)
    packed = pack_params(params)

    q, h_out = rnn_forward(obs, hidden_state, packed,
                           hidden_dim=rnn_hidden_dim, n_actions=n_actions)
    jax.block_until_ready((q, h_out))

    q_ref, h_ref = rnn_reference(obs, hidden_state, params, rnn_hidden_dim)
    assert q.shape == (batch, n_actions)
    assert h_out.shape == (batch, rnn_hidden_dim)
    assert jnp.allclose(q, q_ref, atol=5e-3, rtol=5e-3), "q mismatch vs reference"
    assert jnp.allclose(h_out, h_ref, atol=5e-3, rtol=5e-3), "h_out mismatch vs reference"

    print("KERNEL_OK")
</pallas_src>

<mosaic_0001>
module attributes {stable_mosaic.version = 11 : i64} {
  func.func @rnn_kernel(%arg0: i32, %arg1: memref<64x128xbf16, #tpu.memory_space<vmem>>, %arg2: memref<64x128xf32, #tpu.memory_space<vmem>>, %arg3: memref<128x128xbf16, #tpu.memory_space<vmem>>, %arg4: memref<1x128xf32, #tpu.memory_space<vmem>>, %arg5: memref<256x512xbf16, #tpu.memory_space<vmem>>, %arg6: memref<1x512xf32, #tpu.memory_space<vmem>>, %arg7: memref<128x128xbf16, #tpu.memory_space<vmem>>, %arg8: memref<1x128xf32, #tpu.memory_space<vmem>>, %arg9: memref<64x128xf32, #tpu.memory_space<vmem>>, %arg10: memref<64x128xf32, #tpu.memory_space<vmem>>) attributes {dimension_semantics = [#tpu.dimension_semantics<parallel>], iteration_bounds = array<i64: 1>, scalar_prefetch = 0 : i64, scratch_operands = 0 : i64, tpu.core_type = #tpu.core_type<tc>, window_params = [{transform_indices = @transform_0, window_bounds = array<i64: 64, 128>}, {transform_indices = @transform_1, window_bounds = array<i64: 64, 128>}, {pipeline_mode = #tpu.pipeline_mode<synchronous>, transform_indices = @transform_2, window_bounds = array<i64: 128, 128>}, {pipeline_mode = #tpu.pipeline_mode<synchronous>, transform_indices = @transform_3, window_bounds = array<i64: 1, 128>}, {pipeline_mode = #tpu.pipeline_mode<synchronous>, transform_indices = @transform_4, window_bounds = array<i64: 256, 512>}, {pipeline_mode = #tpu.pipeline_mode<synchronous>, transform_indices = @transform_5, window_bounds = array<i64: 1, 512>}, {pipeline_mode = #tpu.pipeline_mode<synchronous>, transform_indices = @transform_6, window_bounds = array<i64: 128, 128>}, {pipeline_mode = #tpu.pipeline_mode<synchronous>, transform_indices = @transform_7, window_bounds = array<i64: 1, 128>}, {transform_indices = @transform_8, window_bounds = array<i64: 64, 128>}, {transform_indices = @transform_9, window_bounds = array<i64: 64, 128>}]} {
    %c0 = arith.constant 0 : index
    %c0_0 = arith.constant 0 : index
    %0 = vector.load %arg1[%c0, %c0_0] : memref<64x128xbf16, #tpu.memory_space<vmem>>, vector<64x128xbf16>
    %c0_1 = arith.constant 0 : index
    %c0_2 = arith.constant 0 : index
    %1 = vector.load %arg3[%c0_1, %c0_2] : memref<128x128xbf16, #tpu.memory_space<vmem>>, vector<128x128xbf16>
    %cst = arith.constant dense<0.000000e+00> : vector<64x128xf32>
    %2 = tpu.matmul %0, %1, %cst {dimension_numbers = #tpu.dot_dimension_numbers<[1], [0], [0], [1], [0, 0, 1, 1], [], []>} : vector<64x128xbf16>, vector<128x128xbf16>, vector<64x128xf32> -> vector<64x128xf32>
    %c0_3 = arith.constant 0 : index
    %c0_4 = arith.constant 0 : index
    %3 = vector.load %arg4[%c0_3, %c0_4] : memref<1x128xf32, #tpu.memory_space<vmem>>, vector<1x128xf32>
    %4 = vector.broadcast %3 : vector<1x128xf32> to vector<64x128xf32>
    %5 = arith.addf %2, %4 : vector<64x128xf32>
    %cst_5 = arith.constant 0.000000e+00 : f32
    %6 = vector.broadcast %cst_5 : f32 to vector<64x128xf32>
    %7 = arith.maximumf %5, %6 : vector<64x128xf32>
    %c0_6 = arith.constant 0 : index
    %c0_7 = arith.constant 0 : index
    %8 = vector.load %arg2[%c0_6, %c0_7] : memref<64x128xf32, #tpu.memory_space<vmem>>, vector<64x128xf32>
    %9 = arith.truncf %7 : vector<64x128xf32> to vector<64x128xbf16>
    %10 = arith.truncf %8 : vector<64x128xf32> to vector<64x128xbf16>
    %11 = tpu.concatenate %9, %10 in 1 : vector<64x128xbf16>, vector<64x128xbf16> -> vector<64x256xbf16>
    %c0_8 = arith.constant 0 : index
    %c0_9 = arith.constant 0 : index
    %12 = vector.load %arg5[%c0_8, %c0_9] : memref<256x512xbf16, #tpu.memory_space<vmem>>, vector<256x512xbf16>
    %cst_10 = arith.constant dense<0.000000e+00> : vector<64x512xf32>
    %13 = tpu.matmul %11, %12, %cst_10 {dimension_numbers = #tpu.dot_dimension_numbers<[1], [0], [0], [1], [0, 0, 1, 1], [], []>} : vector<64x256xbf16>, vector<256x512xbf16>, vector<64x512xf32> -> vector<64x512xf32>
    %c0_11 = arith.constant 0 : index
    %c0_12 = arith.constant 0 : index
    %14 = vector.load %arg6[%c0_11, %c0_12] : memref<1x512xf32, #tpu.memory_space<vmem>>, vector<1x512xf32>
    %15 = vector.broadcast %14 : vector<1x512xf32> to vector<64x512xf32>
    %16 = arith.addf %13, %15 : vector<64x512xf32>
    %17 = vector.extract_strided_slice %16 {offsets = [0, 0], sizes = [64, 128], strides = [1, 1]} : vector<64x512xf32> to vector<64x128xf32>
    %18 = vector.extract_strided_slice %16 {offsets = [0, 128], sizes = [64, 128], strides = [1, 1]} : vector<64x512xf32> to vector<64x128xf32>
    %19 = vector.extract_strided_slice %16 {offsets = [0, 256], sizes = [64, 128], strides = [1, 1]} : vector<64x512xf32> to vector<64x128xf32>
    %20 = vector.extract_strided_slice %16 {offsets = [0, 384], sizes = [64, 128], strides = [1, 1]} : vector<64x512xf32> to vector<64x128xf32>
    %cst_13 = arith.constant 5.000000e-01 : f32
    %21 = vector.broadcast %cst_13 : f32 to vector<64x128xf32>
    %22 = arith.mulf %21, %17 : vector<64x128xf32>
    %23 = math.tanh %22 : vector<64x128xf32>
    %cst_14 = arith.constant 5.000000e-01 : f32
    %24 = vector.broadcast %cst_14 : f32 to vector<64x128xf32>
    %25 = arith.mulf %24, %23 : vector<64x128xf32>
    %cst_15 = arith.constant 5.000000e-01 : f32
    %26 = vector.broadcast %cst_15 : f32 to vector<64x128xf32>
    %27 = arith.addf %25, %26 : vector<64x128xf32>
    %cst_16 = arith.constant 5.000000e-01 : f32
    %28 = vector.broadcast %cst_16 : f32 to vector<64x128xf32>
    %29 = arith.mulf %28, %18 : vector<64x128xf32>
    %30 = math.tanh %29 : vector<64x128xf32>
    %cst_17 = arith.constant 5.000000e-01 : f32
    %31 = vector.broadcast %cst_17 : f32 to vector<64x128xf32>
    %32 = arith.mulf %31, %30 : vector<64x128xf32>
    %cst_18 = arith.constant 5.000000e-01 : f32
    %33 = vector.broadcast %cst_18 : f32 to vector<64x128xf32>
    %34 = arith.addf %32, %33 : vector<64x128xf32>
    %35 = arith.mulf %27, %20 : vector<64x128xf32>
    %36 = arith.addf %19, %35 : vector<64x128xf32>
    %37 = math.tanh %36 : vector<64x128xf32>
    %cst_19 = arith.constant 1.000000e+00 : f32
    %38 = vector.broadcast %cst_19 : f32 to vector<64x128xf32>
    %39 = arith.subf %38, %34 : vector<64x128xf32>
    %40 = arith.mulf %39, %37 : vector<64x128xf32>
    %41 = arith.mulf %34, %8 : vector<64x128xf32>
    %42 = arith.addf %40, %41 : vector<64x128xf32>
    %c0_20 = arith.constant 0 : index
    %c0_21 = arith.constant 0 : index
    %43 = vector.load %arg10[%c0_20, %c0_21] : memref<64x128xf32, #tpu.memory_space<vmem>>, vector<64x128xf32>
    tpu.vector_store %arg10[%c0_20, %c0_21], %42 {strides = array<i32>} : memref<64x128xf32, #tpu.memory_space<vmem>>, vector<64x128xf32>,
    %44 = arith.truncf %42 : vector<64x128xf32> to vector<64x128xbf16>
    %c0_22 = arith.constant 0 : index
    %c0_23 = arith.constant 0 : index
    %45 = vector.load %arg7[%c0_22, %c0_23] : memref<128x128xbf16, #tpu.memory_space<vmem>>, vector<128x128xbf16>
    %cst_24 = arith.constant dense<0.000000e+00> : vector<64x128xf32>
    %46 = tpu.matmul %44, %45, %cst_24 {dimension_numbers = #tpu.dot_dimension_numbers<[1], [0], [0], [1], [0, 0, 1, 1], [], []>} : vector<64x128xbf16>, vector<128x128xbf16>, vector<64x128xf32> -> vector<64x128xf32>
    %c0_25 = arith.constant 0 : index
    %c0_26 = arith.constant 0 : index
    %47 = vector.load %arg8[%c0_25, %c0_26] : memref<1x128xf32, #tpu.memory_space<vmem>>, vector<1x128xf32>
    %48 = vector.broadcast %47 : vector<1x128xf32> to vector<64x128xf32>
    %49 = arith.addf %46, %48 : vector<64x128xf32>
    %c0_27 = arith.constant 0 : index
    %c0_28 = arith.constant 0 : index
    %50 = vector.load %arg9[%c0_27, %c0_28] : memref<64x128xf32, #tpu.memory_space<vmem>>, vector<64x128xf32>
    tpu.vector_store %arg9[%c0_27, %c0_28], %49 {strides = array<i32>} : memref<64x128xf32, #tpu.memory_space<vmem>>, vector<64x128xf32>,
    return
  }
  func.func @transform_0(%arg0: i32) -> (i32, i32) {
    %c0_i32 = arith.constant 0 : i32
    %c0_i32_0 = arith.constant 0 : i32
    return %arg0, %c0_i32 : i32, i32
  }
  func.func @transform_1(%arg0: i32) -> (i32, i32) {
    %c0_i32 = arith.constant 0 : i32
    %c0_i32_0 = arith.constant 0 : i32
    return %arg0, %c0_i32 : i32, i32
  }
  func.func @transform_2(%arg0: i32) -> (i32, i32) {
    %c0_i32 = arith.constant 0 : i32
    %c0_i32_0 = arith.constant 0 : i32
    %c0_i32_1 = arith.constant 0 : i32
    return %c0_i32, %c0_i32_0 : i32, i32
  }
  func.func @transform_3(%arg0: i32) -> (i32, i32) {
    %c0_i32 = arith.constant 0 : i32
    %c0_i32_0 = arith.constant 0 : i32
    %c0_i32_1 = arith.constant 0 : i32
    return %c0_i32, %c0_i32_0 : i32, i32
  }
  func.func @transform_4(%arg0: i32) -> (i32, i32) {
    %c0_i32 = arith.constant 0 : i32
    %c0_i32_0 = arith.constant 0 : i32
    %c0_i32_1 = arith.constant 0 : i32
    return %c0_i32, %c0_i32_0 : i32, i32
  }
  func.func @transform_5(%arg0: i32) -> (i32, i32) {
    %c0_i32 = arith.constant 0 : i32
    %c0_i32_0 = arith.constant 0 : i32
    %c0_i32_1 = arith.constant 0 : i32
    return %c0_i32, %c0_i32_0 : i32, i32
  }
  func.func @transform_6(%arg0: i32) -> (i32, i32) {
    %c0_i32 = arith.constant 0 : i32
    %c0_i32_0 = arith.constant 0 : i32
    %c0_i32_1 = arith.constant 0 : i32
    return %c0_i32, %c0_i32_0 : i32, i32
  }
  func.func @transform_7(%arg0: i32) -> (i32, i32) {
    %c0_i32 = arith.constant 0 : i32
    %c0_i32_0 = arith.constant 0 : i32
    %c0_i32_1 = arith.constant 0 : i32
    return %c0_i32, %c0_i32_0 : i32, i32
  }
  func.func @transform_8(%arg0: i32) -> (i32, i32) {
    %c0_i32 = arith.constant 0 : i32
    %c0_i32_0 = arith.constant 0 : i32
    return %arg0, %c0_i32 : i32, i32
  }
  func.func @transform_9(%arg0: i32) -> (i32, i32) {
    %c0_i32 = arith.constant 0 : i32
    %c0_i32_0 = arith.constant 0 : i32
    return %arg0, %c0_i32 : i32, i32
  }
}

</mosaic_0001>

<bundles_post_ra>
// kernel: rnn_forward.1
= control target key start
LH: loop header
LB: loop body
LE: loop exit
PB: predicated region body
PF: predicated region fallthrough
CT: control target
= control target key end

     0   :  { %15 = vsyncpa [#allocation3], 0  ;;  %s1769_s0 = inlined_call_operand.vmem [shape: bf16[64,128], index: 0, kind: input, shape index: {}]   ;;  %s1770_s1 = inlined_call_operand.vmem [shape: f32[64,128], index: 1, kind: input, shape index: {}]   ;;  %s1771_s2 = inlined_call_operand.vmem [shape: bf16[128,128], index: 2, kind: input, shape index: {}]   ;;  %s1772_s3 = inlined_call_operand.vmem [shape: f32[1,128], index: 3, kind: input, shape index: {}]   ;;  %s1773_s4 = inlined_call_operand.hbm [shape: bf16[256,512], index: 4, kind: input, shape index: {}]   ;;  %s1774_s5 = inlined_call_operand.vmem [shape: f32[1,512], index: 5, kind: input, shape index: {}]   ;;  %s1775_s6 = inlined_call_operand.vmem [shape: bf16[128,128], index: 6, kind: input, shape index: {}]   ;;  %s1776_s7 = inlined_call_operand.vmem [shape: f32[1,128], index: 7, kind: input, shape index: {}]   ;;  %s1777_s8 = inlined_call_operand.vmem [shape: f32[64,128], index: 8, kind: output, shape index: {0}]   ;;  %s1778_s9 = inlined_call_operand.hbm [shape: f32[64,128], index: 9, kind: output, shape index: {1}]  }
   0x1   :  { %16 = vsyncpa [#allocation4], 0  ;;  %s1464_s30 = smov [#allocation2]   ;;  %s1416_s13 = scalar_lea.hbm %s1773_s4, 8192 }
   0x2   :  { %s30_s10 = sshll.u32 %s1464_s30, 4  ;;  %p1417_p0 = scmp.ne.s32.totalorder %s1773_s4, %s1416_s13  ;;  %s31_s10 = int_to_ptr.vmem [resolvable:$true] %s30_s10 }
   0x3   :  { %p1420_p1 = scmp.lt.u32.totalorder %s1416_s13, %s1773_s4 }
   0x5   :  { %p1422_p2 = pnand %p1420_p1, %p1417_p0 }
   0x7   :  { %1425 = shalt.err (!%p1422_p2)
}
   0x8   :  { %s1426_s18 = scalar_lea.vmem %s31_s10, 8192  ;;  %p1431_p4 = scmp.lt.s32.totalorder %s31_s10, %s31_s10 }
   0x9   :  { %p1427_p3 = scmp.ne.s32.totalorder %s31_s10, %s1426_s18  ;;  %p1432_p5 = scmp.lt.s32.totalorder %s1426_s18, %s1426_s18 }
   0xb   :  { %p1433_p6 = por %p1432_p5, %p1431_p4 }
   0xd   :  { %p1434_p7 = pnand %p1433_p6, %p1427_p3 }
   0xf   :  { %1437 = shalt.err (!%p1434_p7)
}
  0x10   :  { %s1465_s19 = smov 256   ;;  %s1466_s20 = smov 16  }
  0x11   :  { %36 = dma.hbm_to_vmem [thread:$0]  %s1773_s4, 8192, %s31_s10, [#allocation3], %s1465_s19, %s1465_s19, %s1466_s20  }
  0x12   :  { %1460 = dma.done.wait [#allocation3], 8192  }
  0x13   :  { %1461 = vsyncadd [#allocation3], 4294959104  ;;  %v1252_v0 = vld [vmem:[%s1771_s2] sm:$0xff]   ;;  %v1253_v1 = vld [vmem:[%s1771_s2 + $0x8] sm:$0xff]  }
  0x14   :  { %1198 = vmatprep.subr.bf16.mxu0 %v1252_v0  ;;  %v1254_v2 = vld [vmem:[%s1771_s2 + $0x10] sm:$0xff]   ;;  %v1255_v3 = vld [vmem:[%s1771_s2 + $0x18] sm:$0xff]   ;;  %v1260_v4 = vld [vmem:[%s1769_s0] sm:$0xff]  }
  0x15   :  { %1199 = vmatpush3.bf16.msra.mxu0 %v1252_v0  ;;  %1214 = vmatprep.mubr.bf16.mxu0 %v1260_v4  ;;  %v1256_v5 = vld [vmem:[%s1771_s2 + $0x20] sm:$0xff]   ;;  %v1257_v9 = vld [vmem:[%s1771_s2 + $0x28] sm:$0xff]   ;;  %v1258_v12 = vld [vmem:[%s1771_s2 + $0x30] sm:$0xff]  }
  0x16   :  { %1200 = vmatprep.subr.bf16.mxu0 %v1253_v1  ;;  %v1264_v6 = vld [vmem:[#allocation2 + $0x4] ss:$16 sps:$4 sm:$0xff]   ;;  %v1269_v7 = vld [vmem:[#allocation2] ss:$16 sps:$4 sm:$0xff]   ;;  %v1259_v15 = vld [vmem:[%s1771_s2 + $0x38] sm:$0xff]  }
  0x17   :  { %645 = vmatprep.subr.bf16.mxu1 %v1264_v6  ;;  %v1270_v8 = vld [vmem:[#allocation2 + $0x24] ss:$16 sps:$4 sm:$0xff]   ;;  %v1275_v10 = vld [vmem:[#allocation2 + $0x20] ss:$16 sps:$4 sm:$0xff]   ;;  %v1268_v18 = vld [vmem:[#allocation2 + $0xc] ss:$16 sps:$4 sm:$0xff]  }
  0x18   :  { %646 = vmatpush1.bf16.msra.mxu1 %v1269_v7  ;;  %v1276_v11 = vld [vmem:[#allocation2 + $0x44] ss:$16 sps:$4 sm:$0xff]   ;;  %v1281_v13 = vld [vmem:[#allocation2 + $0x40] ss:$16 sps:$4 sm:$0xff]   ;;  %v1261_v21 = vld [vmem:[%s1769_s0 + $0x8] sm:$0xff]  }
  0x19   :  { %1201 = vmatpush3.bf16.msra.mxu0 %v1253_v1  ;;  %647 = vmatprep.subr.bf16.mxu1 %v1270_v8  ;;  %v1282_v14 = vld [vmem:[#allocation2 + $0x64] ss:$16 sps:$4 sm:$0xff]   ;;  %v1287_v16 = vld [vmem:[#allocation2 + $0x60] ss:$16 sps:$4 sm:$0xff]   ;;  %v1266_v23 = vld [vmem:[#allocation2 + $0x8] ss:$16 sps:$4 sm:$0xff]  }
  0x1a   :  { %1202 = vmatprep.subr.bf16.mxu0 %v1254_v2  ;;  %v1288_v17 = vld [vmem:[#allocation2 + $0x84] ss:$16 sps:$4 sm:$0xff]   ;;  %v1293_v19 = vld [vmem:[#allocation2 + $0x80] ss:$16 sps:$4 sm:$0xff]   ;;  %v1274_v24 = vld [vmem:[#allocation2 + $0x2c] ss:$16 sps:$4 sm:$0xff]  }
  0x1b   :  { %v1294_v20 = vld [vmem:[#allocation2 + $0xa4] ss:$16 sps:$4 sm:$0xff]   ;;  %v1299_v25 = vld [vmem:[#allocation2 + $0xa0] ss:$16 sps:$4 sm:$0xff]   ;;  %v1272_v27 = vld [vmem:[#allocation2 + $0x28] ss:$16 sps:$4 sm:$0xff]  }
  0x1c   :  { %648 = vmatpush1.bf16.msra.mxu1 %v1275_v10  ;;  %v1262_v22 = vld [vmem:[%s1769_s0 + $0x10] sm:$0xff]   ;;  %v1280_v28 = vld [vmem:[#allocation2 + $0x4c] ss:$16 sps:$4 sm:$0xff]   ;;  %v1278_v32 = vld [vmem:[#allocation2 + $0x48] ss:$16 sps:$4 sm:$0xff]  }
  0x1d   :  { %1203 = vmatpush3.bf16.msra.mxu0 %v1254_v2  ;;  %649 = vmatprep.subr.bf16.mxu1 %v1276_v11  ;;  %v1300_v26 = vld [vmem:[#allocation2 + $0xc4] ss:$16 sps:$4 sm:$0xff]   ;;  %v1305_v29 = vld [vmem:[#allocation2 + $0xc0] ss:$16 sps:$4 sm:$0xff]   ;;  %v1263_v31 = vld [vmem:[%s1769_s0 + $0x18] sm:$0xff]  }
  0x1e   :  { %1204 = vmatprep.subr.bf16.mxu0 %v1255_v3  ;;  %v1306_v30 = vld [vmem:[#allocation2 + $0xe4] ss:$16 sps:$4 sm:$0xff]   ;;  %v1286_v33 = vld [vmem:[#allocation2 + $0x6c] ss:$16 sps:$4 sm:$0xff]   ;;  %v1311_v34 = vld [vmem:[#allocation2 + $0xe0] ss:$16 sps:$4 sm:$0xff]  }
  0x1f   :  { %v1312_v35 = vld [vmem:[#allocation2 + $0x104] ss:$16 sps:$4 sm:$0xff]   ;;  %v1284_v36 = vld [vmem:[#allocation2 + $0x68] ss:$16 sps:$4 sm:$0xff]   ;;  %v1292_v37 = vld [vmem:[#allocation2 + $0x8c] ss:$16 sps:$4 sm:$0xff]  }
  0x20   :  { %650 = vmatpush1.bf16.msra.mxu1 %v1281_v13  ;;  %v1317_v38 = vld [vmem:[#allocation2 + $0x100] ss:$16 sps:$4 sm:$0xff]   ;;  %v1318_v39 = vld [vmem:[#allocation2 + $0x124] ss:$16 sps:$4 sm:$0xff]   ;;  %v1290_v40 = vld [vmem:[#allocation2 + $0x88] ss:$16 sps:$4 sm:$0xff]  }
  0x21   :  { %1205 = vmatpush3.bf16.msra.mxu0 %v1255_v3  ;;  %651 = vmatprep.subr.bf16.mxu1 %v1282_v14  ;;  %v1298_v41 = vld [vmem:[#allocation2 + $0xac] ss:$16 sps:$4 sm:$0xff]   ;;  %v1323_v42 = vld [vmem:[#allocation2 + $0x120] ss:$16 sps:$4 sm:$0xff]   ;;  %v1296_v43 = vld [vmem:[#allocation2 + $0xa8] ss:$16 sps:$4 sm:$0xff]  }
  0x22   :  { %1206 = vmatprep.subr.bf16.mxu0 %v1256_v5  ;;  %v1324_v44 = vld [vmem:[#allocation2 + $0x144] ss:$16 sps:$4 sm:$0xff]   ;;  %v1304_v45 = vld [vmem:[#allocation2 + $0xcc] ss:$16 sps:$4 sm:$0xff]   ;;  %v1329_v46 = vld [vmem:[#allocation2 + $0x140] ss:$16 sps:$4 sm:$0xff]  }
  0x23   :  { %v1330_v47 = vld [vmem:[#allocation2 + $0x164] ss:$16 sps:$4 sm:$0xff]   ;;  %v1302_v48 = vld [vmem:[#allocation2 + $0xc8] ss:$16 sps:$4 sm:$0xff]   ;;  %v1310_v49 = vld [vmem:[#allocation2 + $0xec] ss:$16 sps:$4 sm:$0xff]  }
  0x24   :  { %652 = vmatpush1.bf16.msra.mxu1 %v1287_v16  ;;  %v1335_v50 = vld [vmem:[#allocation2 + $0x160] ss:$16 sps:$4 sm:$0xff]   ;;  %v1336_v51 = vld [vmem:[#allocation2 + $0x184] ss:$16 sps:$4 sm:$0xff]   ;;  %v1308_v52 = vld [vmem:[#allocation2 + $0xe8] ss:$16 sps:$4 sm:$0xff]  }
  0x25   :  { %1207 = vmatpush3.bf16.msra.mxu0 %v1256_v5  ;;  %653 = vmatprep.subr.bf16.mxu1 %v1288_v17  ;;  %v1316_v53 = vld [vmem:[#allocation2 + $0x10c] ss:$16 sps:$4 sm:$0xff]   ;;  %v1341_v54 = vld [vmem:[#allocation2 + $0x180] ss:$16 sps:$4 sm:$0xff]   ;;  %v1342_v55 = vld [vmem:[#allocation2 + $0x1a4] ss:$16 sps:$4 sm:$0xff]  }
  0x26   :  { %1208 = vmatprep.subr.bf16.mxu0 %v1257_v9  ;;  %v1314_v56 = vld [vmem:[#allocation2 + $0x108] ss:$16 sps:$4 sm:$0xff]   ;;  %v1322_v57 = vld [vmem:[#allocation2 + $0x12c] ss:$16 sps:$4 sm:$0xff]   ;;  %v1347_v58 = vld [vmem:[#allocation2 + $0x1a0] ss:$16 sps:$4 sm:$0xff]  }
  0x27   :  { %v1320_v59 = vld [vmem:[#allocation2 + $0x128] ss:$16 sps:$4 sm:$0xff]   ;;  %v1328_v60 = vld [vmem:[#allocation2 + $0x14c] ss:$16 sps:$4 sm:$0xff]   ;;  %v1348_v4 = vld [vmem:[#allocation2 + $0x1c4] ss:$16 sps:$4 sm:$0xff]  }
  0x28   :  { %654 = vmatpush1.bf16.msra.mxu1 %v1293_v19  ;;  %v1326_v61 = vld [vmem:[#allocation2 + $0x148] ss:$16 sps:$4 sm:$0xff]   ;;  %v1334_v62 = vld [vmem:[#allocation2 + $0x16c] ss:$16 sps:$4 sm:$0xff]   ;;  %v1353_v7 = vld [vmem:[#allocation2 + $0x1c0] ss:$16 sps:$4 sm:$0xff]  }
  0x29   :  { %1209 = vmatpush3.bf16.msra.mxu0 %v1257_v9  ;;  %655 = vmatprep.subr.bf16.mxu1 %v1294_v20  ;;  %v1332_v63 = vld [vmem:[#allocation2 + $0x168] ss:$16 sps:$4 sm:$0xff]   ;;  %v1340_v0 = vld [vmem:[#allocation2 + $0x18c] ss:$16 sps:$4 sm:$0xff]   ;;  %v1354_v8 = vld [vmem:[#allocation2 + $0x1e4] ss:$16 sps:$4 sm:$0xff]  }
  0x2a   :  { %1210 = vmatprep.subr.bf16.mxu0 %v1258_v12  ;;  %v1338_v1 = vld [vmem:[#allocation2 + $0x188] ss:$16 sps:$4 sm:$0xff]   ;;  %v1346_v2 = vld [vmem:[#allocation2 + $0x1ac] ss:$16 sps:$4 sm:$0xff]   ;;  %v1359_v11 = vld [vmem:[#allocation2 + $0x1e0] ss:$16 sps:$4 sm:$0xff]  }
  0x2b   :  { %v1344_v3 = vld [vmem:[#allocation2 + $0x1a8] ss:$16 sps:$4 sm:$0xff]   ;;  %v1352_v5 = vld [vmem:[#allocation2 + $0x1cc] ss:$16 sps:$4 sm:$0xff]  }
  0x2c   :  { %656 = vmatpush1.bf16.msra.mxu1 %v1299_v25  ;;  %v1350_v6 = vld [vmem:[#allocation2 + $0x1c8] ss:$16 sps:$4 sm:$0xff]   ;;  %v1358_v9 = vld [vmem:[#allocation2 + $0x1ec] ss:$16 sps:$4 sm:$0xff]  }
  0x2d   :  { %1211 = vmatpush3.bf16.msra.mxu0 %v1258_v12  ;;  %657 = vmatprep.subr.bf16.mxu1 %v1300_v26  ;;  %v1356_v10 = vld [vmem:[#allocation2 + $0x1e8] ss:$16 sps:$4 sm:$0xff]   ;;  %v1571_v12 = vld [vmem:[%s1770_s1] sm:$0xff] }
  0x2e   :  { %1212 = vmatprep.subr.bf16.mxu0 %v1259_v15  ;;  %v1576_v13 = vld [vmem:[%s1770_s1 + $0x8] sm:$0xff]  ;;  %v1591_v25 = vld [vmem:[%s1770_s1 + $0x18] sm:$0xff] }
  0x2f   :  { %v235_v14 = vpack.c.bf16 %v1576_v13, %v1571_v12 }
  0x30   :  { %658 = vmatpush1.bf16.msra.mxu1 %v1305_v29 }
  0x31   :  { %1213 = vmatpush3.bf16.msra.mxu0 %v1259_v15  ;;  %659 = vmatprep.subr.bf16.mxu1 %v1306_v30  ;;  %v1088_v15 = vld [vmem:[%s1772_s3] ss:$0 sm:$0xff] }
  0x32   :  { %718 = vmatprep.subr.bf16.mxu0 %v1268_v18  ;;  %677 = vmatprep.mubr.bf16.mxu1 %v235_v14 }
  0x34   :  { %1215 = vmatmul.mubr.bf16.vlgmr.msra.gmra.mrb[0].mxu0 %v1261_v21  ;;  %660 = vmatpush1.bf16.msra.mxu1 %v1311_v34 }
  0x35   :  { %1218 = vmatprep.mubr.bf16.mxu0 %v1262_v22  ;;  %719 = vmatpush1.bf16.msra.mxu0 %v1266_v23 }
  0x36   :  { %720 = vmatprep.subr.bf16.mxu0 %v1274_v24  ;;  %661 = vmatprep.subr.bf16.mxu1 %v1312_v35  ;;  %v1586_v24 = vld [vmem:[%s1770_s1 + $0x10] sm:$0xff] }
  0x38   :  { %662 = vmatpush1.bf16.msra.mxu1 %v1317_v38 }
  0x39   :  { %721 = vmatpush1.bf16.msra.mxu0 %v1272_v27  ;;  %663 = vmatprep.subr.bf16.mxu1 %v1318_v39 }
  0x3a   :  { %722 = vmatprep.subr.bf16.mxu0 %v1280_v28 }
  0x3c   :  { %1219 = vmatmul.mubr.bf16.gmra.mrb[4].mxu0 %v1263_v31  ;;  %664 = vmatpush1.bf16.msra.mxu1 %v1323_v42  ;;  %v236_v31 = vpack.c.bf16 %v1591_v25, %v1586_v24 }
  0x3d   :  { %723 = vmatpush1.bf16.msra.mxu0 %v1278_v32  ;;  %665 = vmatprep.subr.bf16.mxu1 %v1324_v44  ;;  %v1603_v44 = vld [vmem:[%s1770_s1 + $0x28] sm:$0xff] }
  0x3e   :  { %724 = vmatprep.subr.bf16.mxu0 %v1286_v33  ;;  %750 = vmatprep.mubr.bf16.mxu0 %v235_v14 }
  0x40   :  { %666 = vmatpush1.bf16.msra.mxu1 %v1329_v46 }
  0x41   :  { %725 = vmatpush1.bf16.msra.mxu0 %v1284_v36  ;;  %667 = vmatprep.subr.bf16.mxu1 %v1330_v47 }
  0x42   :  { %726 = vmatprep.subr.bf16.mxu0 %v1292_v37 }
  0x44   :  { %668 = vmatpush1.bf16.msra.mxu1 %v1335_v50  ;;  %v1610_v50 = vld [vmem:[%s1770_s1 + $0x30] sm:$0xff] }
  0x45   :  { %727 = vmatpush1.bf16.msra.mxu0 %v1290_v40  ;;  %669 = vmatprep.subr.bf16.mxu1 %v1336_v51  ;;  %v1615_v51 = vld [vmem:[%s1770_s1 + $0x38] sm:$0xff] }
  0x46   :  { %728 = vmatprep.subr.bf16.mxu0 %v1298_v41 }
  0x48   :  { %670 = vmatpush1.bf16.msra.mxu1 %v1341_v54  ;;  %v1361_v54 = vld [vmem:[%s1775_s6 + $0x8] sm:$0xff]  }
  0x49   :  { %729 = vmatpush1.bf16.msra.mxu0 %v1296_v43  ;;  %671 = vmatprep.subr.bf16.mxu1 %v1342_v55  ;;  %v1598_v43 = vld [vmem:[%s1770_s1 + $0x20] sm:$0xff]  ;;  %v1362_v55 = vld [vmem:[%s1775_s6 + $0x10] sm:$0xff]  }
  0x4a   :  { %730 = vmatprep.subr.bf16.mxu0 %v1304_v45 }
  0x4c   :  { %672 = vmatpush1.bf16.msra.mxu1 %v1347_v58  ;;  %v1365_v58 = vld [vmem:[%s1775_s6 + $0x28] sm:$0xff]  }
  0x4d   :  { %731 = vmatpush1.bf16.msra.mxu0 %v1302_v48  ;;  %673 = vmatprep.subr.bf16.mxu1 %v1348_v4  ;;  %v237_v48 = vpack.c.bf16 %v1603_v44, %v1598_v43 }
  0x4e   :  { %732 = vmatprep.subr.bf16.mxu0 %v1310_v49 }
  0x50   :  { %674 = vmatpush1.bf16.msra.mxu1 %v1353_v7 }
  0x51   :  { %733 = vmatpush1.bf16.msra.mxu0 %v1308_v52  ;;  %675 = vmatprep.subr.bf16.mxu1 %v1354_v8  ;;  %v238_v52 = vpack.c.bf16 %v1615_v51, %v1610_v50 }
  0x52   :  { %734 = vmatprep.subr.bf16.mxu0 %v1316_v53  ;;  %v1360_v53 = vld [vmem:[%s1775_s6] sm:$0xff]  }
  0x54   :  { %676 = vmatpush1.bf16.msra.mxu1 %v1359_v11 }
  0x55   :  { %735 = vmatpush1.bf16.msra.mxu0 %v1314_v56  ;;  %1222 = vmatprep.subr.bf16.mxu1 %v1360_v53  ;;  %v1363_v56 = vld [vmem:[%s1775_s6 + $0x18] sm:$0xff]  }
  0x56   :  { %736 = vmatprep.subr.bf16.mxu0 %v1322_v57  ;;  %v1364_v57 = vld [vmem:[%s1775_s6 + $0x20] sm:$0xff]  }
  0x59   :  { %737 = vmatpush1.bf16.msra.mxu0 %v1320_v59  ;;  %v1366_v59 = vld [vmem:[%s1775_s6 + $0x30] sm:$0xff]  }
  0x5a   :  { %738 = vmatprep.subr.bf16.mxu0 %v1328_v60  ;;  %v1367_v60 = vld [vmem:[%s1775_s6 + $0x38] sm:$0xff]  }
  0x5d   :  { %739 = vmatpush1.bf16.msra.mxu0 %v1326_v61  ;;  %v305_v61 = vlaneseq }
  0x5e   :  { %740 = vmatprep.subr.bf16.mxu0 %v1334_v62 }
  0x5f   :  { %v306_v62 = vshrl.u32 %v305_v61, 7 }
  0x61   :  { %741 = vmatpush1.bf16.msra.mxu0 %v1332_v63  ;;  %v307_v63 = vsub.s32 0, %v306_v62 }
  0x62   :  { %742 = vmatprep.subr.bf16.mxu0 %v1340_v0  ;;  %v303_v0 = vld [vmem:[%s1774_s5] sm:$0xf]  ;;  %s1467_s5 = smov [#allocation5]  }
  0x63   :  { %s1074_s6 = sshll.u32 %s1467_s5, 4  ;;  %s1075_s6 = int_to_ptr.vmem [resolvable:$true] %s1074_s6 }
  0x64   :  { %s1438_s3 = scalar_lea.vmem %s1075_s6, 1024  ;;  %p1443_p9 = scmp.lt.s32.totalorder %s1075_s6, %s1075_s6 }
  0x65   :  { %743 = vmatpush1.bf16.msra.mxu0 %v1338_v1  ;;  %v311_v1 = vsub.s32 1, %v306_v62  ;;  %p1439_p8 = scmp.ne.s32.totalorder %s1075_s6, %s1438_s3  ;;  %p1444_p10 = scmp.lt.s32.totalorder %s1438_s3, %s1438_s3 }
  0x66   :  { %744 = vmatprep.subr.bf16.mxu0 %v1346_v2  ;;  %v1646_v2 = vrot.slane %v303_v0, %v307_v63 }
  0x67   :  { %p1445_p11 = por %p1444_p10, %p1443_p9 }
  0x69   :  { %745 = vmatpush1.bf16.msra.mxu0 %v1344_v3  ;;  %p1446_p12 = pnand %p1445_p11, %p1439_p8 }
  0x6a   :  { %746 = vmatprep.subr.bf16.mxu0 %v1352_v5  ;;  %v1648_v5 = vrot.slane %v303_v0, %v311_v1 }
  0x6d   :  { %747 = vmatpush1.bf16.msra.mxu0 %v1350_v6 }
  0x6e   :  { %748 = vmatprep.subr.bf16.mxu0 %v1358_v9 }
  0x71   :  { %749 = vmatpush1.bf16.msra.mxu0 %v1356_v10 }
 0x107   :  { %v1216_v16 = vpop.f32.mrb[0].mxu0 }
 0x108   :  { %v193_v17 = vadd.f32 %v1216_v16, %v1088_v15  ;;  %v184_v18 = vpop.f32.mrb[1].mxu0 }
 0x109   :  { %v185_v19 = vadd.f32 %v1088_v15, %v184_v18  ;;  %v1217_v20 = vpop.f32.mrb[2].mxu0 }
 0x10a   :  { %v196_v21 = vadd.f32 %v1217_v20, %v1088_v15  ;;  %v187_v22 = vpop.f32.mrb[3].mxu0  ;;  %v217_v26 = vmax.f32 %v193_v17, 0.0 }
 0x10b   :  { %v188_v23 = vadd.f32 %v1088_v15, %v187_v22  ;;  %v215_v28 = vmax.f32 %v185_v19, 0.0 }
 0x10c   :  { %v218_v27 = vmax.f32 %v196_v21, 0.0 }
 0x10d   :  { %v216_v29 = vmax.f32 %v188_v23, 0.0 }
 0x10e   :  { %v232_v30 = vpack.c.bf16 %v218_v27, %v217_v26 }
 0x10f   :  { %v231_v32 = vpack.c.bf16 %v216_v29, %v215_v28  ;;  %v1220_v33 = vpop.f32.mrb[4].mxu0  ;;  %v319_v28 = vsub.s32 3, %v306_v62 }
 0x110   :  { %v209_v34 = vadd.f32 %v1220_v33, %v1088_v15  ;;  %v200_v35 = vpop.f32.mrb[5].mxu0 }
 0x111   :  { %678 = vmatmul.mubr.bf16.vlgmr.msra.gmra.mrb[0].mxu1 %v231_v32  ;;  %751 = vmatmul.mubr.bf16.vlgmr.msra.gmra.mrb[8].mxu0 %v231_v32  ;;  %v201_v36 = vadd.f32 %v1088_v15, %v200_v35  ;;  %v1221_v37 = vpop.f32.mrb[6].mxu0  ;;  %v315_v32 = vsub.s32 2, %v306_v62 }
 0x112   :  { %v221_v38 = vmax.f32 %v209_v34, 0.0  ;;  %v212_v39 = vadd.f32 %v1221_v37, %v1088_v15  ;;  %v203_v40 = vpop.f32.mrb[7].mxu0  ;;  %687 = vmatprep.mubr.bf16.mxu1 %v236_v31  ;;  %760 = vmatprep.mubr.bf16.mxu0 %v236_v31 }
 0x113   :  { %v219_v41 = vmax.f32 %v201_v36, 0.0  ;;  %v204_v42 = vadd.f32 %v1088_v15, %v203_v40  ;;  %1223 = vmatpush3.bf16.msra.mxu1 %v1360_v53 }
 0x114   :  { %v222_v45 = vmax.f32 %v212_v39, 0.0  ;;  %1224 = vmatprep.subr.bf16.mxu1 %v1361_v54  ;;  %v1665_v39 = vrot.slane %v303_v0, %v319_v28 }
 0x115   :  { %v220_v46 = vmax.f32 %v204_v42, 0.0  ;;  %v1668_v42 = vrot.slane %v303_v0, %v315_v32 }
 0x116   :  { %v234_v47 = vpack.c.bf16 %v222_v45, %v221_v38 }
 0x117   :  { %v233_v49 = vpack.c.bf16 %v220_v46, %v219_v41  ;;  %1225 = vmatpush3.bf16.msra.mxu1 %v1361_v54 }
 0x118   :  { %1226 = vmatprep.subr.bf16.mxu1 %v1362_v55 }
 0x119   :  { %688 = vmatmul.mubr.bf16.gmra.mrb[4].mxu1 %v232_v30  ;;  %761 = vmatmul.mubr.bf16.gmra.mrb[12].mxu0 %v232_v30 }
 0x11a   :  { %697 = vmatprep.mubr.bf16.mxu1 %v237_v48  ;;  %770 = vmatprep.mubr.bf16.mxu0 %v237_v48 }
 0x11b   :  { %1227 = vmatpush3.bf16.msra.mxu1 %v1362_v55 }
 0x11c   :  { %1228 = vmatprep.subr.bf16.mxu1 %v1363_v56 }
 0x11f   :  { %1229 = vmatpush3.bf16.msra.mxu1 %v1363_v56 }
 0x120   :  { %1230 = vmatprep.subr.bf16.mxu1 %v1364_v57 }
 0x121   :  { %698 = vmatmul.mubr.bf16.gmra.mrb[8].mxu1 %v233_v49  ;;  %771 = vmatmul.mubr.bf16.gmra.mrb[16].mxu0 %v233_v49 }
 0x122   :  { %707 = vmatprep.mubr.bf16.mxu1 %v238_v52  ;;  %780 = vmatprep.mubr.bf16.mxu0 %v238_v52 }
 0x123   :  { %1231 = vmatpush3.bf16.msra.mxu1 %v1364_v57 }
 0x124   :  { %1232 = vmatprep.subr.bf16.mxu1 %v1365_v58 }
 0x127   :  { %1233 = vmatpush3.bf16.msra.mxu1 %v1365_v58 }
 0x128   :  { %1234 = vmatprep.subr.bf16.mxu1 %v1366_v59 }
 0x129   :  { %708 = vmatmul.mubr.bf16.gmra.mrb[12].mxu1 %v234_v47  ;;  %781 = vmatmul.mubr.bf16.gmra.mrb[20].mxu0 %v234_v47 }
 0x12b   :  { %1235 = vmatpush3.bf16.msra.mxu1 %v1366_v59 }
 0x12c   :  { %1236 = vmatprep.subr.bf16.mxu1 %v1367_v60 }
 0x12f   :  { %1237 = vmatpush3.bf16.msra.mxu1 %v1367_v60 }
 0x1e4   :  { %v679_v3 = vpop.f32.mrb[0].mxu1  ;;  %v752_v4 = vpop.f32.mrb[8].mxu0 }
 0x1e5   :  { %v680_v6 = vadd.f32 %v679_v3, %v1646_v2  ;;  %v681_v7 = vpop.f32.mrb[1].mxu1  ;;  %v754_v8 = vpop.f32.mrb[9].mxu0  ;;  %v753_v61 = vadd.f32 %v752_v4, %v1668_v42 }
 0x1e6   :  { %v683_v9 = vpop.f32.mrb[2].mxu1  ;;  %v756_v10 = vpop.f32.mrb[10].mxu0  ;;  %v682_v17 = vadd.f32 %v681_v7, %v1648_v5  ;;  %v755_v55 = vadd.f32 %v754_v8, %v1665_v39 }
 0x1e7   :  { %v791_v11 = vmul.f32 0.5, %v680_v6  ;;  %v684_v14 = vadd.f32 %v683_v9, %v1646_v2  ;;  %v685_v15 = vpop.f32.mrb[3].mxu1  ;;  %v758_v16 = vpop.f32.mrb[11].mxu0  ;;  %v757_v9 = vadd.f32 %v756_v10, %v1668_v42 }
 0x1e8   :  { %v686_v19 = vadd.f32 %v685_v15, %v1648_v5  ;;  %v823_v20 = vmul.f32 0.5, %v682_v17  ;;  %v759_v62 = vadd.f32 %v758_v16, %v1665_v39 }
 0x1e9   :  { %1368 = vtanh.f32 %v791_v11  ;;  %v792_v18 = vmul.f32 0.5, %v684_v14 }
 0x1ea   :  { %v824_v29 = vmul.f32 0.5, %v686_v19 }
 0x1eb   :  { %1370 = vtanh.f32 %v792_v18 }
 0x1ec   :  { %v689_v21 = vpop.f32.mrb[4].mxu1  ;;  %v1654_v22 = vpop.f32.mrb[12].mxu0  ;;  %1372 = vtanh.f32 %v823_v20 }
 0x1ed   :  { %v690_v23 = vadd.f32 %v689_v21, %v1646_v2  ;;  %v691_v26 = vpop.f32.mrb[5].mxu1  ;;  %v1657_v27 = vpop.f32.mrb[13].mxu0  ;;  %v763_v10 = vadd.f32 %v1654_v22, %v1668_v42 }
 0x1ee   :  { %v693_v30 = vpop.f32.mrb[6].mxu1  ;;  %v1659_v31 = vpop.f32.mrb[14].mxu0  ;;  %v692_v37 = vadd.f32 %v691_v26, %v1648_v5 }
 0x1ef   :  { %v793_v33 = vmul.f32 0.5, %v690_v23  ;;  %v694_v34 = vadd.f32 %v693_v30, %v1646_v2  ;;  %v695_v35 = vpop.f32.mrb[7].mxu1  ;;  %v1662_v36 = vpop.f32.mrb[15].mxu0 }
 0x1f0   :  { %v696_v40 = vadd.f32 %v695_v35, %v1648_v5  ;;  %v825_v46 = vmul.f32 0.5, %v692_v37 }
 0x1f1   :  { %1374 = vtanh.f32 %v793_v33  ;;  %v794_v38 = vmul.f32 0.5, %v694_v34  ;;  %v765_v34 = vadd.f32 %v1657_v27, %v1665_v39 }
 0x1f2   :  { %1376 = vtanh.f32 %v824_v29  ;;  %v826_v58 = vmul.f32 0.5, %v696_v40 }
 0x1f3   :  { %v1369_v41 = vpop.eup %1368  ;;  %1378 = vtanh.f32 %v794_v38 }
 0x1f4   :  { %v807_v45 = vmul.f32 0.5, %v1369_v41  ;;  %v699_v47 = vpop.f32.mrb[8].mxu1  ;;  %v1670_v48 = vpop.f32.mrb[16].mxu0  ;;  %1380 = vtanh.f32 %v825_v46 }
 0x1f5   :  { %v1371_v49 = vpop.eup %1370  ;;  %v700_v52 = vadd.f32 %v699_v47, %v1646_v2  ;;  %v701_v53 = vpop.f32.mrb[9].mxu1 }
 0x1f6   :  { %v1673_v54 = vpop.f32.mrb[17].mxu0  ;;  %v815_v56 = vadd.f32 0.5, %v807_v45  ;;  %v808_v57 = vmul.f32 0.5, %v1371_v49  ;;  %v703_v59 = vpop.f32.mrb[10].mxu1  ;;  %v702_v8 = vadd.f32 %v701_v53, %v1648_v5  ;;  %v769_v45 = vadd.f32 %v1662_v36, %v1665_v39 }
 0x1f7   :  { %v1676_v60 = vpop.f32.mrb[18].mxu0  ;;  %v795_v63 = vmul.f32 0.5, %v700_v52  ;;  %v704_v0 = vadd.f32 %v703_v59, %v1646_v2  ;;  %v705_v1 = vpop.f32.mrb[11].mxu1 }
 0x1f8   :  { %v1681_v3 = vpop.f32.mrb[19].mxu0  ;;  %v855_v6 = vmul.f32 %v815_v56, %v755_v55  ;;  %v816_v7 = vadd.f32 0.5, %v808_v57  ;;  %v1373_v11 = vpop.eup %1372  ;;  %v706_v17 = vadd.f32 %v705_v1, %v1648_v5  ;;  %v827_v21 = vmul.f32 0.5, %v702_v8 }
 0x1f9   :  { %1382 = vtanh.f32 %v795_v63  ;;  %v796_v4 = vmul.f32 0.5, %v704_v0  ;;  %v839_v29 = vmul.f32 0.5, %v1373_v11  ;;  %v775_v11 = vadd.f32 %v1673_v54, %v1665_v39 }
 0x1fa   :  { %v863_v14 = vadd.f32 %v855_v6, %v753_v61  ;;  %v856_v15 = vmul.f32 %v816_v7, %v759_v62  ;;  %1384 = vtanh.f32 %v826_v58  ;;  %v828_v22 = vmul.f32 0.5, %v706_v17 }
 0x1fb   :  { %v1375_v16 = vpop.eup %1374  ;;  %v847_v27 = vadd.f32 0.5, %v839_v29  ;;  %v767_v58 = vadd.f32 %v1659_v31, %v1668_v42 }
 0x1fc   :  { %v1377_v18 = vpop.eup %1376  ;;  %1386 = vtanh.f32 %v863_v14  ;;  %v864_v19 = vadd.f32 %v856_v15, %v757_v9  ;;  %v809_v20 = vmul.f32 0.5, %v1375_v16  ;;  %v709_v23 = vpop.f32.mrb[12].mxu1 }
 0x1fd   :  { %v1686_v26 = vpop.f32.mrb[20].mxu0  ;;  %v1379_v28 = vpop.eup %1378  ;;  %1388 = vtanh.f32 %v796_v4  ;;  %v710_v30 = vadd.f32 %v709_v23, %v1646_v2  ;;  %v840_v41 = vmul.f32 0.5, %v1377_v18  ;;  %v879_v8 = vsub.f32 1.0, %v847_v27 }
 0x1fe   :  { %v711_v32 = vpop.f32.mrb[13].mxu1  ;;  %v1691_v33 = vpop.f32.mrb[21].mxu0  ;;  %1390 = vtanh.f32 %v864_v19  ;;  %v817_v35 = vadd.f32 0.5, %v809_v20  ;;  %v810_v37 = vmul.f32 0.5, %v1379_v28  ;;  %v895_v31 = vmul.f32 %v847_v27, %v1571_v12 }
 0x1ff   :  { %v713_v38 = vpop.f32.mrb[14].mxu1  ;;  %v1695_v40 = vpop.f32.mrb[22].mxu0  ;;  %v797_v46 = vmul.f32 0.5, %v710_v30  ;;  %1392 = vtanh.f32 %v827_v21  ;;  %v712_v55 = vadd.f32 %v711_v32, %v1648_v5  ;;  %v848_v62 = vadd.f32 0.5, %v840_v41 }
 0x200   :  { %v715_v47 = vpop.f32.mrb[15].mxu1  ;;  %v1699_v49 = vpop.f32.mrb[23].mxu0  ;;  %v857_v52 = vmul.f32 %v817_v35, %v765_v34  ;;  %v818_v53 = vadd.f32 0.5, %v810_v37  ;;  %v714_v36 = vadd.f32 %v713_v38, %v1646_v2  ;;  %v773_v20 = vadd.f32 %v1670_v48, %v1668_v42 }
 0x201   :  { %1394 = vtanh.f32 %v797_v46  ;;  %v1381_v56 = vpop.eup %1380  ;;  %v829_v63 = vmul.f32 0.5, %v712_v55  ;;  %v716_v2 = vadd.f32 %v715_v47, %v1648_v5  ;;  %v880_v16 = vsub.f32 1.0, %v848_v62 }
 0x202   :  { %v865_v57 = vadd.f32 %v857_v52, %v763_v10  ;;  %v858_v59 = vmul.f32 %v818_v53, %v769_v45  ;;  %1396 = vtanh.f32 %v828_v22  ;;  %v798_v7 = vmul.f32 0.5, %v714_v36 }
 0x203   :  { %v1383_v61 = vpop.eup %1382  ;;  %v841_v9 = vmul.f32 0.5, %v1381_v56  ;;  %v896_v54 = vmul.f32 %v848_v62, %v1576_v13  ;;  %v779_v5 = vadd.f32 %v1681_v3, %v1665_v39  ;;  %v830_v34 = vmul.f32 0.5, %v716_v2 }
 0x204   :  { %v1385_v0 = vpop.eup %1384  ;;  %1398 = vtanh.f32 %v865_v57  ;;  %v866_v1 = vadd.f32 %v858_v59, %v767_v58  ;;  %v811_v6 = vmul.f32 0.5, %v1383_v61  ;;  %v777_v48 = vadd.f32 %v1676_v60, %v1668_v42 }
 0x205   :  { %v842_v17 = vmul.f32 0.5, %v1385_v0  ;;  %v849_v28 = vadd.f32 0.5, %v841_v9  ;;  %v785_v3 = vadd.f32 %v1691_v33, %v1665_v39  ;;  %v783_v59 = vadd.f32 %v1686_v26, %v1668_v42 }
 0x206   :  { %v1387_v14 = vpop.eup %1386  ;;  %1400 = vtanh.f32 %v866_v1  ;;  %v819_v15 = vadd.f32 0.5, %v811_v6 }
 0x207   :  { %v1389_v4 = vpop.eup %1388  ;;  %1402 = vtanh.f32 %v798_v7  ;;  %v887_v18 = vmul.f32 %v1387_v14, %v879_v8  ;;  %v850_v37 = vadd.f32 0.5, %v842_v17  ;;  %v881_v22 = vsub.f32 1.0, %v849_v28 }
 0x208   :  { %v1391_v19 = vpop.eup %1390  ;;  %v859_v21 = vmul.f32 %v819_v15, %v775_v11  ;;  %v812_v23 = vmul.f32 0.5, %v1389_v4  ;;  %1404 = vtanh.f32 %v829_v63  ;;  %v897_v27 = vmul.f32 %v849_v28, %v1586_v24 }
 0x209   :  { %v888_v12 = vmul.f32 %v1391_v19, %v880_v16  ;;  %v903_v29 = vadd.f32 %v895_v31, %v887_v18  ;;  %v1393_v10 = vpop.eup %1392  ;;  %v882_v56 = vsub.f32 1.0, %v850_v37  ;;  %v898_v58 = vmul.f32 %v850_v37, %v1591_v25 }
 0x20a   :  { %v867_v30 = vadd.f32 %v859_v21, %v773_v20  ;;  %v820_v32 = vadd.f32 0.5, %v812_v23  ;;  %v843_v46 = vmul.f32 0.5, %v1393_v10  ;;  %v789_v8 = vadd.f32 %v1699_v49, %v1665_v39 }
 0x20b   :  { %v1395_v35 = vpop.eup %1394  ;;  %v904_v38 = vadd.f32 %v896_v54, %v888_v12  ;;  %911 = vst [vmem:[#allocation5] sm:$0xff] %v903_v29  ;;  %v787_v15 = vadd.f32 %v1695_v40, %v1668_v42 }
 0x20c   :  { %1406 = vtanh.f32 %v867_v30  ;;  %v860_v41 = vmul.f32 %v820_v32, %v779_v5  ;;  %v813_v13 = vmul.f32 0.5, %v1395_v35  ;;  %v1397_v45 = vpop.eup %1396  ;;  %v851_v62 = vadd.f32 0.5, %v843_v46 }
 0x20d   :  { %912 = vst [vmem:[#allocation5 + $0x8] sm:$0xff] %v904_v38  ;;  %v919_v47 = vpack.c.bf16 %v904_v38, %v903_v29  ;;  %1408 = vtanh.f32 %v830_v34  ;;  %v844_v63 = vmul.f32 0.5, %v1397_v45 }
 0x20e   :  { %v1399_v52 = vpop.eup %1398  ;;  %v868_v53 = vadd.f32 %v860_v41, %v777_v48  ;;  %v821_v55 = vadd.f32 0.5, %v813_v13  ;;  %v883_v9 = vsub.f32 1.0, %v851_v62  ;;  %v899_v4 = vmul.f32 %v851_v62, %v1598_v43 }
 0x20f   :  { %1238 = vmatprep.mubr.bf16.mxu1 %v919_v47  ;;  %v889_v57 = vmul.f32 %v1399_v52, %v881_v22  ;;  %v852_v11 = vadd.f32 0.5, %v844_v63 }
 0x210   :  { %v1401_v60 = vpop.eup %1400  ;;  %1410 = vtanh.f32 %v868_v53  ;;  %v861_v36 = vmul.f32 %v821_v55, %v785_v3 }
 0x211   :  { %v1403_v61 = vpop.eup %1402  ;;  %v890_v0 = vmul.f32 %v1401_v60, %v882_v56  ;;  %v905_v33 = vadd.f32 %v897_v27, %v889_v57  ;;  %v884_v19 = vsub.f32 1.0, %v852_v11  ;;  %v900_v21 = vmul.f32 %v852_v11, %v1603_v44 }
 0x212   :  { %v1405_v1 = vpop.eup %1404  ;;  %v869_v6 = vadd.f32 %v861_v36, %v783_v59  ;;  %v814_v7 = vmul.f32 0.5, %v1403_v61 }
 0x213   :  { %v906_v24 = vadd.f32 %v898_v58, %v890_v0  ;;  %913 = vst [vmem:[#allocation5 + $0x10] sm:$0xff] %v905_v33  ;;  %v845_v14 = vmul.f32 0.5, %v1405_v1 }
 0x214   :  { %1412 = vtanh.f32 %v869_v6  ;;  %v822_v25 = vadd.f32 0.5, %v814_v7 }
 0x215   :  { %914 = vst [vmem:[#allocation5 + $0x18] sm:$0xff] %v906_v24  ;;  %v920_v26 = vpack.c.bf16 %v906_v24, %v905_v33  ;;  %v853_v20 = vadd.f32 0.5, %v845_v14 }
 0x216   :  { %v1407_v31 = vpop.eup %1406  ;;  %v862_v2 = vmul.f32 %v822_v25, %v789_v8 }
 0x217   :  { %1239 = vmatmul.mubr.bf16.vlgmr.msra.gmra.mrb[16].mxu1 %v920_v26  ;;  %v891_v16 = vmul.f32 %v1407_v31, %v883_v9  ;;  %v1409_v17 = vpop.eup %1408  ;;  %v885_v28 = vsub.f32 1.0, %v853_v20  ;;  %v901_v40 = vmul.f32 %v853_v20, %v1610_v50 }
 0x218   :  { %v870_v18 = vadd.f32 %v862_v2, %v787_v15  ;;  %v846_v23 = vmul.f32 0.5, %v1409_v17 }
 0x219   :  { %v907_v39 = vadd.f32 %v899_v4, %v891_v16 }
 0x21a   :  { %v1411_v49 = vpop.eup %1410  ;;  %1414 = vtanh.f32 %v870_v18  ;;  %v854_v43 = vadd.f32 0.5, %v846_v23 }
 0x21b   :  { %v892_v54 = vmul.f32 %v1411_v49, %v884_v19  ;;  %915 = vst [vmem:[#allocation5 + $0x20] sm:$0xff] %v907_v39 }
 0x21c   :  { %v886_v5 = vsub.f32 1.0, %v854_v43  ;;  %v902_v34 = vmul.f32 %v854_v43, %v1615_v51 }
 0x21d   :  { %v908_v12 = vadd.f32 %v900_v21, %v892_v54 }
 0x21e   :  { %v1413_v42 = vpop.eup %1412 }
 0x21f   :  { %916 = vst [vmem:[#allocation5 + $0x28] sm:$0xff] %v908_v12  ;;  %v921_v29 = vpack.c.bf16 %v908_v12, %v907_v39  ;;  %v893_v10 = vmul.f32 %v1413_v42, %v885_v28 }
 0x221   :  { %1242 = vmatprep.mubr.bf16.mxu1 %v921_v29  ;;  %v909_v30 = vadd.f32 %v901_v40, %v893_v10 }
 0x223   :  { %917 = vst [vmem:[#allocation5 + $0x30] sm:$0xff] %v909_v30 }
 0x224   :  { %v1415_v32 = vpop.eup %1414 }
 0x225   :  { %v894_v44 = vmul.f32 %v1415_v32, %v886_v5 }
 0x227   :  { %v910_v35 = vadd.f32 %v902_v34, %v894_v44 }
 0x229   :  { %918 = vst [vmem:[#allocation5 + $0x38] sm:$0xff] %v910_v35  ;;  %v922_v37 = vpack.c.bf16 %v910_v35, %v909_v30 }
 0x22b   :  { %1243 = vmatmul.mubr.bf16.gmra.mrb[20].mxu1 %v922_v37 }
 0x22c   :  { %1449 = shalt.err (!%p1446_p12)
}
 0x22d   :  { %s1450_s13 = scalar_lea.hbm %s1778_s9, 1024 }
 0x22e   :  { %p1451_p13 = scmp.ne.s32.totalorder %s1778_s9, %s1450_s13  ;;  %p1454_p0 = scmp.lt.u32.totalorder %s1450_s13, %s1778_s9 }
 0x230   :  { %p1456_p1 = pnand %p1454_p0, %p1451_p13 }
 0x232   :  { %1459 = shalt.err (!%p1456_p1)
}
 0x233   :  { %s1468_s18 = smov 128   ;;  %s1469_s19 = smov 8   ;;  %v1165_v50 = vld [vmem:[%s1776_s7] ss:$0 sm:$0xff] }
 0x234   :  { %1080 = dma.vmem_to_hbm [thread:$0]  %s1075_s6, 1024, %s1778_s9, [#allocation4], %s1468_s18, %s1468_s18, %s1469_s19  }
 0x2ea   :  { %v1240_v51 = vpop.f32.mrb[16].mxu1 }
 0x2eb   :  { %v1037_v38 = vadd.f32 %v1240_v51, %v1165_v50  ;;  %v1028_v48 = vpop.f32.mrb[17].mxu1 }
 0x2ec   :  { %v1029_v41 = vadd.f32 %v1165_v50, %v1028_v48  ;;  %v1241_v13 = vpop.f32.mrb[18].mxu1 }
 0x2ed   :  { %1061 = vst [vmem:[%s1777_s8 + $0x10] sm:$0xff] %v1037_v38  ;;  %v1040_v45 = vadd.f32 %v1241_v13, %v1165_v50  ;;  %v1031_v22 = vpop.f32.mrb[19].mxu1 }
 0x2ee   :  { %1059 = vst [vmem:[%s1777_s8] sm:$0xff] %v1029_v41  ;;  %v1032_v46 = vadd.f32 %v1165_v50, %v1031_v22 }
 0x2ef   :  { %1062 = vst [vmem:[%s1777_s8 + $0x18] sm:$0xff] %v1040_v45 }
 0x2f0   :  { %1060 = vst [vmem:[%s1777_s8 + $0x8] sm:$0xff] %v1032_v46 }
 0x2fe   :  { %v1244_v47 = vpop.f32.mrb[20].mxu1 }
 0x2ff   :  { %v1053_v52 = vadd.f32 %v1244_v47, %v1165_v50  ;;  %v1044_v53 = vpop.f32.mrb[21].mxu1 }
 0x300   :  { %v1045_v3 = vadd.f32 %v1165_v50, %v1044_v53  ;;  %v1245_v55 = vpop.f32.mrb[22].mxu1 }
 0x301   :  { %1065 = vst [vmem:[%s1777_s8 + $0x30] sm:$0xff] %v1053_v52  ;;  %v1056_v27 = vadd.f32 %v1245_v55, %v1165_v50  ;;  %v1047_v56 = vpop.f32.mrb[23].mxu1 }
 0x302   :  { %1063 = vst [vmem:[%s1777_s8 + $0x20] sm:$0xff] %v1045_v3  ;;  %v1048_v57 = vadd.f32 %v1165_v50, %v1047_v56 }
 0x303   :  { %1066 = vst [vmem:[%s1777_s8 + $0x38] sm:$0xff] %v1056_v27 }
 0x304   :  { %1064 = vst [vmem:[%s1777_s8 + $0x28] sm:$0xff] %v1048_v57 }
 0x305   :  { %1462 = dma.done.wait [#allocation4], 1024  }
 0x306   :  { %1463 = vsyncadd [#allocation4], 4294966272 }
 0x307   :  { %1086 = vsyncpa [#allocation3], 1 }
 0x308   :  { %1087 = vsyncpa [#allocation4], 1 }

</bundles_post_ra>
